<compile_context>
chip_gen: v5e
topology: v5e:2x2
jax: 0.10.0
libtpu: 0.0.40
codegen_flags: <defaults>
</compile_context>

<pallas_src>
import math

import jax
import jax.numpy as jnp
from jax.experimental import pallas as pl
from jax.experimental.pallas import tpu as pltpu

# ---------------------------------------------------------------------------
# Dimensions. DATASET_DIM / MODEL_DIM are not defined in the PyTorch snippet;
# pick small deterministic values consistent with the STATE_DIM formula.
# ---------------------------------------------------------------------------
ACTION_DIM = 7
DATASET_DIM = 4
MODEL_DIM = 3
STATE_DIM = (ACTION_DIM - 1) * (DATASET_DIM + MODEL_DIM) + 1  # = 43
HIDDEN = 64

_MAX_TB = 512  # max batch-tile rows per grid step (multiple of 8)


def _round_up(x, m):
    return ((x + m - 1) // m) * m


def _mlp_value_kernel(x_ref, w1_ref, b1_ref, w2_ref, b2_ref, w3_ref, b3_ref,
                      out_ref):
    """Fused fc1 -> relu -> fc2 -> relu -> fc3 for one (TB, STATE_DIM) tile."""
    # fc1: bf16 operands on the MXU, f32 accumulation.
    x = x_ref[...].astype(jnp.bfloat16)                          # (TB, S)
    h1 = jnp.dot(x, w1_ref[...], preferred_element_type=jnp.float32)
    h1 = jnp.maximum(h1 + b1_ref[...], 0.0)                      # (TB, 64) f32

    # fc2: same pattern.
    h2 = jnp.dot(h1.astype(jnp.bfloat16), w2_ref[...],
                 preferred_element_type=jnp.float32)
    h2 = jnp.maximum(h2 + b2_ref[...], 0.0)                      # (TB, 64) f32

    # fc3 (out_features == 1): VPU multiply + lane reduction instead of a
    # badly underutilized N=1 MXU matmul. w3_ref is the (1, 64) row of fc3.
    v = jnp.sum(h2 * w3_ref[...], axis=-1, keepdims=True)        # (TB, 1)

    # b3 is a scalar living in SMEM.
    out_ref[...] = (v + b3_ref[0, 0]).astype(out_ref.dtype)


def ppo_value_forward(state, params, *, max_tile=_MAX_TB):
    """PPO value network forward pass with a single batch-tiled pallas_call.

    Args:
        state: (B, STATE_DIM) float32 array.
        params: dict with
            w1 (STATE_DIM, 64) bf16, b1 (1, 64) f32,
            w2 (64, 64)        bf16, b2 (1, 64) f32,
            w3_row (1, 64)     f32,  b3 (1, 1)  f32.

    Returns:
        (B, 1) float32 state values.
    """
    B = state.shape[0]
    TB = min(max_tile, _round_up(max(B, 1), 8))
    B_pad = _round_up(B, TB)
    if B_pad != B:
        state = jnp.pad(state, ((0, B_pad - B), (0, 0)))
    grid = (B_pad // TB,)

    # Weights/biases: block index is always (0, 0) -> stay resident in VMEM,
    # no re-DMA across grid steps.
    def resident(shape):
        return pl.BlockSpec(shape, lambda i: (0,) * len(shape))

    out = pl.pallas_call(
        _mlp_value_kernel,
        out_shape=jax.ShapeDtypeStruct((B_pad, 1), jnp.float32),
        grid=grid,
        in_specs=[
            pl.BlockSpec((TB, STATE_DIM), lambda i: (i, 0)),     # state tile
            resident((STATE_DIM, HIDDEN)),                       # w1 (bf16)
            resident((1, HIDDEN)),                               # b1 (f32)
            resident((HIDDEN, HIDDEN)),                          # w2 (bf16)
            resident((1, HIDDEN)),                               # b2 (f32)
            resident((1, HIDDEN)),                               # w3 row (f32)
            pl.BlockSpec(memory_space=pltpu.MemorySpace.SMEM),   # b3 scalar
        ],
        out_specs=pl.BlockSpec((TB, 1), lambda i: (i, 0)),
        compiler_params=pltpu.CompilerParams(
            dimension_semantics=("parallel",),      # dual-TC sharding on v7x
            vmem_limit_bytes=32 * 1024 * 1024,      # fits all generations
        ),
    )(state, params["w1"], params["b1"], params["w2"], params["b2"],
      params["w3_row"], params["b3"])
    return out[:B]


def init_params(key):
    """Deterministic init mimicking PyTorch nn.Linear default
    (U[-1/sqrt(fan_in), 1/sqrt(fan_in)]). Weights stored as (in, out); fc1/fc2
    weights are kept in bf16 (MXU-native operands), fc3 as a (1, 64) f32 row.
    """
    def linear(key, fan_in, fan_out):
        kw, kb = jax.random.split(key)
        bound = 1.0 / math.sqrt(fan_in)
        w = jax.random.uniform(kw, (fan_in, fan_out), jnp.float32, -bound, bound)
        b = jax.random.uniform(kb, (1, fan_out), jnp.float32, -bound, bound)
        return w, b

    k1, k2, k3 = jax.random.split(key, 3)
    w1, b1 = linear(k1, STATE_DIM, HIDDEN)
    w2, b2 = linear(k2, HIDDEN, HIDDEN)
    w3, b3 = linear(k3, HIDDEN, 1)
    return dict(
        w1=w1.astype(jnp.bfloat16), b1=b1,
        w2=w2.astype(jnp.bfloat16), b2=b2,
        w3_row=w3.T,                                   # (1, 64) f32
        b3=b3.reshape(1, 1),                           # (1, 1)  f32 -> SMEM
    )


def ppo_value_forward_ref(state, params):
    """Pure-JAX reference with the same numerics (bf16 operands, f32 acc)."""
    h1 = jnp.dot(state.astype(jnp.bfloat16), params["w1"],
                 preferred_element_type=jnp.float32)
    h1 = jnp.maximum(h1 + params["b1"], 0.0)
    h2 = jnp.dot(h1.astype(jnp.bfloat16), params["w2"],
                 preferred_element_type=jnp.float32)
    h2 = jnp.maximum(h2 + params["b2"], 0.0)
    return jnp.sum(h2 * params["w3_row"], axis=-1, keepdims=True) + params["b3"]


if __name__ == "__main__":
    key = jax.random.PRNGKey(0)
    k_params, k_state = jax.random.split(key)

    params = init_params(k_params)
    batch = 8
    state = jax.random.normal(k_state, (batch, STATE_DIM), dtype=jnp.float32)

    value = ppo_value_forward(state, params)
    value = jax.block_until_ready(value)

    ref = ppo_value_forward_ref(state, params)
    assert value.shape == (batch, 1), value.shape
    assert jnp.allclose(value, ref, atol=1e-3, rtol=1e-3), (
        f"max abs err {jnp.max(jnp.abs(value - ref))}")

    print("KERNEL_OK")
</pallas_src>

<mosaic_0001>
module attributes {stable_mosaic.version = 11 : i64} {
  func.func @_mlp_value_kernel(%arg0: i32, %arg1: memref<8x43xf32, #tpu.memory_space<vmem>>, %arg2: memref<43x64xbf16, #tpu.memory_space<vmem>>, %arg3: memref<1x64xf32, #tpu.memory_space<vmem>>, %arg4: memref<64x64xbf16, #tpu.memory_space<vmem>>, %arg5: memref<1x64xf32, #tpu.memory_space<vmem>>, %arg6: memref<1x64xf32, #tpu.memory_space<vmem>>, %arg7: memref<1x1xf32, #tpu.memory_space<smem>>, %arg8: memref<8x1xf32, #tpu.memory_space<vmem>>) attributes {dimension_semantics = [#tpu.dimension_semantics<parallel>], iteration_bounds = array<i64: 1>, scalar_prefetch = 0 : i64, scratch_operands = 0 : i64, tpu.core_type = #tpu.core_type<tc>, window_params = [{transform_indices = @transform_0, window_bounds = array<i64: 8, 43>}, {pipeline_mode = #tpu.pipeline_mode<synchronous>, transform_indices = @transform_1, window_bounds = array<i64: 43, 64>}, {pipeline_mode = #tpu.pipeline_mode<synchronous>, transform_indices = @transform_2, window_bounds = array<i64: 1, 64>}, {pipeline_mode = #tpu.pipeline_mode<synchronous>, transform_indices = @transform_3, window_bounds = array<i64: 64, 64>}, {pipeline_mode = #tpu.pipeline_mode<synchronous>, transform_indices = @transform_4, window_bounds = array<i64: 1, 64>}, {pipeline_mode = #tpu.pipeline_mode<synchronous>, transform_indices = @transform_5, window_bounds = array<i64: 1, 64>}, {transform_indices = @transform_6, window_bounds = array<i64: 1, 1>}, {transform_indices = @transform_7, window_bounds = array<i64: 8, 1>}]} {
    %c0 = arith.constant 0 : index
    %c0_0 = arith.constant 0 : index
    %0 = vector.load %arg1[%c0, %c0_0] : memref<8x43xf32, #tpu.memory_space<vmem>>, vector<8x43xf32>
    %1 = arith.truncf %0 : vector<8x43xf32> to vector<8x43xbf16>
    %c0_1 = arith.constant 0 : index
    %c0_2 = arith.constant 0 : index
    %2 = vector.load %arg2[%c0_1, %c0_2] : memref<43x64xbf16, #tpu.memory_space<vmem>>, vector<43x64xbf16>
    %cst = arith.constant dense<0.000000e+00> : vector<8x64xf32>
    %3 = tpu.matmul %1, %2, %cst {dimension_numbers = #tpu.dot_dimension_numbers<[1], [0], [0], [1], [0, 0, 1, 1], [], []>} : vector<8x43xbf16>, vector<43x64xbf16>, vector<8x64xf32> -> vector<8x64xf32>
    %c0_3 = arith.constant 0 : index
    %c0_4 = arith.constant 0 : index
    %4 = vector.load %arg3[%c0_3, %c0_4] : memref<1x64xf32, #tpu.memory_space<vmem>>, vector<1x64xf32>
    %5 = vector.broadcast %4 : vector<1x64xf32> to vector<8x64xf32>
    %6 = arith.addf %3, %5 : vector<8x64xf32>
    %cst_5 = arith.constant 0.000000e+00 : f32
    %7 = vector.broadcast %cst_5 : f32 to vector<8x64xf32>
    %8 = arith.maximumf %6, %7 : vector<8x64xf32>
    %9 = arith.truncf %8 : vector<8x64xf32> to vector<8x64xbf16>
    %c0_6 = arith.constant 0 : index
    %c0_7 = arith.constant 0 : index
    %10 = vector.load %arg4[%c0_6, %c0_7] : memref<64x64xbf16, #tpu.memory_space<vmem>>, vector<64x64xbf16>
    %cst_8 = arith.constant dense<0.000000e+00> : vector<8x64xf32>
    %11 = tpu.matmul %9, %10, %cst_8 {dimension_numbers = #tpu.dot_dimension_numbers<[1], [0], [0], [1], [0, 0, 1, 1], [], []>} : vector<8x64xbf16>, vector<64x64xbf16>, vector<8x64xf32> -> vector<8x64xf32>
    %c0_9 = arith.constant 0 : index
    %c0_10 = arith.constant 0 : index
    %12 = vector.load %arg5[%c0_9, %c0_10] : memref<1x64xf32, #tpu.memory_space<vmem>>, vector<1x64xf32>
    %13 = vector.broadcast %12 : vector<1x64xf32> to vector<8x64xf32>
    %14 = arith.addf %11, %13 : vector<8x64xf32>
    %cst_11 = arith.constant 0.000000e+00 : f32
    %15 = vector.broadcast %cst_11 : f32 to vector<8x64xf32>
    %16 = arith.maximumf %14, %15 : vector<8x64xf32>
    %c0_12 = arith.constant 0 : index
    %c0_13 = arith.constant 0 : index
    %17 = vector.load %arg6[%c0_12, %c0_13] : memref<1x64xf32, #tpu.memory_space<vmem>>, vector<1x64xf32>
    %18 = vector.broadcast %17 : vector<1x64xf32> to vector<8x64xf32>
    %19 = arith.mulf %16, %18 : vector<8x64xf32>
    %cst_14 = arith.constant dense<0.000000e+00> : vector<8xf32>
    %20 = vector.multi_reduction <add>, %19, %cst_14 [1] : vector<8x64xf32> to vector<8xf32>
    %21 = vector.shape_cast %20 : vector<8xf32> to vector<8x1xf32>
    %c0_15 = arith.constant 0 : index
    %c0_16 = arith.constant 0 : index
    %22 = memref.load %arg7[%c0_15, %c0_16] : memref<1x1xf32, #tpu.memory_space<smem>>
    %23 = vector.broadcast %22 : f32 to vector<8x1xf32>
    %24 = arith.addf %21, %23 : vector<8x1xf32>
    %c0_17 = arith.constant 0 : index
    %c0_18 = arith.constant 0 : index
    %25 = vector.load %arg8[%c0_17, %c0_18] : memref<8x1xf32, #tpu.memory_space<vmem>>, vector<8x1xf32>
    tpu.vector_store %arg8[%c0_17, %c0_18], %24 {strides = array<i32>} : memref<8x1xf32, #tpu.memory_space<vmem>>, vector<8x1xf32>,
    return
  }
  func.func @transform_0(%arg0: i32) -> (i32, i32) {
    %c0_i32 = arith.constant 0 : i32
    %c0_i32_0 = arith.constant 0 : i32
    return %arg0, %c0_i32 : i32, i32
  }
  func.func @transform_1(%arg0: i32) -> (i32, i32) {
    %c0_i32 = arith.constant 0 : i32
    %c0_i32_0 = arith.constant 0 : i32
    %c0_i32_1 = arith.constant 0 : i32
    return %c0_i32, %c0_i32_0 : i32, i32
  }
  func.func @transform_2(%arg0: i32) -> (i32, i32) {
    %c0_i32 = arith.constant 0 : i32
    %c0_i32_0 = arith.constant 0 : i32
    %c0_i32_1 = arith.constant 0 : i32
    return %c0_i32, %c0_i32_0 : i32, i32
  }
  func.func @transform_3(%arg0: i32) -> (i32, i32) {
    %c0_i32 = arith.constant 0 : i32
    %c0_i32_0 = arith.constant 0 : i32
    %c0_i32_1 = arith.constant 0 : i32
    return %c0_i32, %c0_i32_0 : i32, i32
  }
  func.func @transform_4(%arg0: i32) -> (i32, i32) {
    %c0_i32 = arith.constant 0 : i32
    %c0_i32_0 = arith.constant 0 : i32
    %c0_i32_1 = arith.constant 0 : i32
    return %c0_i32, %c0_i32_0 : i32, i32
  }
  func.func @transform_5(%arg0: i32) -> (i32, i32) {
    %c0_i32 = arith.constant 0 : i32
    %c0_i32_0 = arith.constant 0 : i32
    %c0_i32_1 = arith.constant 0 : i32
    return %c0_i32, %c0_i32_0 : i32, i32
  }
  func.func @transform_6(%arg0: i32) -> (i32, i32) {
    %c0_i32 = arith.constant 0 : i32
    %c0_i32_0 = arith.constant 0 : i32
    %c0_i32_1 = arith.constant 0 : i32
    return %c0_i32, %c0_i32_0 : i32, i32
  }
  func.func @transform_7(%arg0: i32) -> (i32, i32) {
    %c0_i32 = arith.constant 0 : i32
    %c0_i32_0 = arith.constant 0 : i32
    return %arg0, %c0_i32 : i32, i32
  }
}

</mosaic_0001>

<bundles_post_ra>
// kernel: tpu_custom_call.1
= control target key start
LH: loop header
LB: loop body
LE: loop exit
PB: predicated region body
PF: predicated region fallthrough
CT: control target
= control target key end

     0   :  { %13 = vsyncpa [#allocation4], 0  ;;  %s393_s0 = inlined_call_operand.hbm [shape: f32[8,43], index: 0, kind: input, shape index: {}]   ;;  %s394_s1 = inlined_call_operand.hbm [shape: bf16[43,64], index: 1, kind: input, shape index: {}]   ;;  %s395_s2 = inlined_call_operand.vmem [shape: f32[1,64], index: 2, kind: input, shape index: {}]   ;;  %s396_s3 = inlined_call_operand.hbm [shape: bf16[64,64], index: 3, kind: input, shape index: {}]   ;;  %s397_s4 = inlined_call_operand.vmem [shape: f32[1,64], index: 4, kind: input, shape index: {}]   ;;  %s398_s5 = inlined_call_operand.vmem [shape: f32[1,64], index: 5, kind: input, shape index: {}]   ;;  %s399_s6 = inlined_call_operand.<no memory space> [shape: f32[1,1], index: 6, kind: input, shape index: {}]   ;;  %s400_s7 = inlined_call_operand.vmem [shape: f32[8,1], index: 7, kind: output, shape index: {}]  }
   0x1   :  { %14 = vsyncpa [#allocation6], 0  ;;  %s30_s26 = sshll.u32 %s394_s1, 4  ;;  %s323_s27 = smov [#allocation5]   ;;  %s31_s26 = int_to_ptr.hbm [resolvable:$true] %s30_s26 }
   0x2   :  { %s32_s28 = sshll.u32 %s323_s27, 4  ;;  %s20_s8 = sshll.u32 %s393_s0, 4  ;;  %s33_s28 = int_to_ptr.vmem [resolvable:$true] %s32_s28  ;;  %s21_s8 = int_to_ptr.hbm [resolvable:$true] %s20_s8 }
   0x3   :  { %s324_s9 = smov 64   ;;  %s325_s10 = smov 4  }
   0x4   :  { %38 = dma.hbm_to_vmem [thread:$0]  %s31_s26, 384, %s33_s28, [#allocation6], %s324_s9, %s324_s9, %s325_s10  }
   0x5   :  { %s326_s11 = smov [#allocation3]   ;;  %s45_s15 = sshll.u32 %s396_s3, 4  ;;  %s46_s15 = int_to_ptr.hbm [resolvable:$true] %s45_s15 }
   0x6   :  { %s22_s12 = sshll.u32 %s326_s11, 4  ;;  %s327_s1 = smov [#allocation7]   ;;  %s23_s12 = int_to_ptr.vmem [resolvable:$true] %s22_s12 }
   0x7   :  { %25 = dma.hbm_to_vmem [thread:$0]  %s21_s8, 128, %s23_s12, [#allocation4]  }
   0x8   :  { %s47_s16 = sshll.u32 %s327_s1, 4  ;;  %s48_s16 = int_to_ptr.vmem [resolvable:$true] %s47_s16 }
   0x9   :  { %53 = dma.hbm_to_vmem [thread:$0]  %s46_s15, 512, %s48_s16, [#allocation6], %s324_s9, %s324_s9, %s325_s10  }
   0xa   :  { %319 = dma.done.wait [#allocation4], 128  }
   0xb   :  { %320 = vsyncadd [#allocation4], 4294967168 }
   0xc   :  { %321 = dma.done.wait [#allocation6], 896  }
   0xd   :  { %322 = vsyncadd [#allocation6], 4294966400  ;;  %vm106_vm0 = vcmask 1044480   ;;  %vm107_vm1 = vcmask 1045504   ;;  %v328_v0 = vmov 65535   ;;  %v237_v6 = vld [vmem:[#allocation7 + $0x18] sm:$0xff]  ;;  %v191_v29 = vstv %s399_s6 }
   0xe   :  { %v108_v1 = vsel %vm106_vm0, 4294967295, %v328_v0  ;;  %v211_v2 = vld [vmem:[#allocation5 + $0x10] sm:$0xf]  ;;  %v233_v3 = vld [vmem:[#allocation5 + $0x10] sm:$0x30]  ;;  %172 = vmatpush.bf16.msra.mxu1 %v237_v6  ;;  %v236_v8 = vld [vmem:[#allocation7 + $0x10] sm:$0xff] }
   0xf   :  { %v109_v4 = vsel %vm107_vm1, %v108_v1, 0  ;;  %v212_v5 = vor.u32 %v233_v3, %v211_v2  ;;  %v232_v9 = vld [vmem:[#allocation5 + $0x8] sm:$0xff]  ;;  %v231_v10 = vld [vmem:[#allocation5] sm:$0xff]  ;;  %v73_v11 = vld [vmem:[#allocation3] sm:$0xff]  ;;  %vm102_vm2 = vcmask 351232   ;;  %vm164_vm3 = vcmask 523264  }
  0x10   :  { %v74_v12 = vpack.c.bf16 %v73_v11, %v73_v11  ;;  %v235_v13 = vld [vmem:[#allocation7 + $0x8] sm:$0xff]  ;;  %v234_v14 = vld [vmem:[#allocation7] sm:$0xff]  ;;  %vm193_vm4 = vcmask 7168  }
  0x11   :  { %v111_v7 = vand.u32 %v212_v5, %v109_v4  ;;  %v244_v15 = vld [vmem:[%s395_s2] ss:$0 sm:$0xff] }
  0x12   :  { %173 = vmatpush.bf16.msra.mxu1 %v236_v8  ;;  %v245_v21 = vld [vmem:[%s397_s4] ss:$0 sm:$0xff] }
  0x13   :  { %118 = vmatpush.bf16.msra.mxu0 %v111_v7  ;;  %v246_v24 = vld [vmem:[%s398_s5] ss:$0 sm:$0xff] }
  0x16   :  { %174 = vmatpush.bf16.msra.mxu1 %v235_v13 }
  0x17   :  { %119 = vmatpush.bf16.msra.mxu0 %v232_v9 }
  0x1a   :  { %175 = vmatpush.bf16.msra.mxu1 %v234_v14 }
  0x1b   :  { %120 = vmatpush.bf16.msra.mxu0 %v231_v10 }
  0x1e   :  { %213 = vmatmul.msk.bf16.vlgmr.msra.gmra.mxu0 %vm102_vm2, %v74_v12 }
  0x9b   :  { %v122_v16 = vpop.f32.mrf.mxu0 }
  0x9c   :  { %v123_v17 = vadd.f32 %v244_v15, %v122_v16 }
  0x9e   :  { %v126_v18 = vmax.f32 %v123_v17, 0.0 }
  0xa0   :  { %v127_v19 = vpack.c.bf16 %v126_v18, %v126_v18 }
  0xa2   :  { %230 = vmatmul.msk.bf16.vlgmr.msra.gmra.mxu1 %vm164_vm3, %v127_v19 }
  0xa3   :  { %v124_v20 = vpop.f32.mrf.mxu0 }
 0x11f   :  { %v177_v22 = vpop.f32.mrf.mxu1 }
 0x120   :  { %v178_v23 = vadd.f32 %v245_v21, %v177_v22 }
 0x122   :  { %v181_v25 = vmax.f32 %v178_v23, 0.0 }
 0x124   :  { %v186_v26 = vmul.f32 %v246_v24, %v181_v25 }
 0x126   :  { %v187_v27 = vsel %vm164_vm3, %v186_v26, 0.0 }
 0x127   :  { %v179_v28 = vpop.f32.mrf.mxu1  ;;  %188 = vadd.xlane.f32.xlu0 %v187_v27 }
 0x19a   :  { %v189_v30 = vpop.xlane.xlu0 %188 }
 0x19b   :  { %v192_v31 = vadd.f32 %v191_v29, %v189_v30 }
 0x19d   :  { %194 = vst.msk [vmem:[%s400_s7] sm:$0xff] %vm193_vm4, %v192_v31 }
 0x19e   :  { %199 = vsyncpa [#allocation4], 1 }
 0x19f   :  { %200 = vsyncpa [#allocation6], 1 }

</bundles_post_ra>
